<compile_context>
chip_gen: v7x
topology: tpu7x:2x2x1
jax: 0.10.0
libtpu: 0.0.40
codegen_flags: <defaults>
</compile_context>

<pallas_src>
import functools
import math

import numpy as np

import jax
import jax.numpy as jnp
from jax.experimental import pallas as pl
from jax.experimental.pallas import tpu as pltpu


def _round_up(a: int, b: int) -> int:
    return (a + b - 1) // b * b


def _cdiv(a: int, b: int) -> int:
    return (a + b - 1) // b


def _sublane_pack(dtype) -> int:
    return {4: 8, 2: 16, 1: 32}.get(jnp.dtype(dtype).itemsize, 8)


def _vmem_resident_budget() -> int:
    """Bytes the pipelined working set (double-buffered in + out + mask) may occupy."""
    try:
        kind = jax.devices()[0].device_kind.lower()
    except Exception:
        kind = ""
    if "v7" in kind:
        return 24 << 20   # ~6 MiB data blocks; under the 32 MiB scoped default, << 64 MiB VMEM
    if "v6" in kind:
        return 16 << 20   # ~4 MiB data blocks; under the 32 MiB scoped default
    return 8 << 20        # v5e / unknown: 16 MiB scoped default is the tightest


# ----------------------------- kernels ---------------------------------------------------


def _mask_copy_kernel(m_ref, x_ref, o_ref, *, padding_value):
    """One 0/1 mask value per row, broadcast across the lane axis."""
    x = x_ref[...]
    pad = jnp.asarray(padding_value, dtype=x.dtype)
    o_ref[...] = jnp.where(m_ref[...] > 0.0, pad, x)


def _mask_copy_fold_kernel(m_ref, oh_ref, x_ref, o_ref, *, padding_value):
    """Folded rows: expand the (tm, k) row mask to (tm, k*D) lanes on the (idle) MXU."""
    x = x_ref[...]
    pad = jnp.asarray(padding_value, dtype=x.dtype)
    lane_mask = jnp.dot(m_ref[...], oh_ref[...], preferred_element_type=jnp.float32)
    o_ref[...] = jnp.where(lane_mask > 0.5, pad, x)


def _mask_copy_cf_kernel(m_ref, x_ref, o_ref, *, padding_value):
    """channel_first: mask varies along lanes (spatial), broadcast across sublanes (C)."""
    x = x_ref[...]                                   # (1, tc, ts)
    pad = jnp.asarray(padding_value, dtype=x.dtype)
    o_ref[...] = jnp.where(m_ref[...] > 0.0, pad, x)  # m: (1, 1, ts) broadcasts over tc


# ----------------------------- wrappers ---------------------------------------------------


def _dropblock_last(x, key, dropout_rate, padding_value):
    shape = x.shape
    D = int(shape[-1])
    R = int(np.prod(shape[:-1], dtype=np.int64)) if len(shape) > 1 else 1
    itemsize = jnp.dtype(x.dtype).itemsize
    pack = _sublane_pack(x.dtype)
    budget = _vmem_resident_budget()

    # One 0/1 decision per row, matching torch.rand(x.shape[:-1]) < dropout_rate.
    u = jax.random.uniform(key, (R,), dtype=jnp.float32)
    m = (u < jnp.float32(dropout_rate)).astype(jnp.float32)

    # Lane-dense fold: pack k consecutive rows into one lcm(D, 128)-wide folded row, but
    # only when that is free (R % k == 0 -> contiguous reshape, no padding copy needed).
    k = 1
    if 0 < D < 128:
        kd = math.lcm(D, 128)
        if kd <= 1024 and R % (kd // D) == 0:
            k = kd // D
    W = k * D
    R2 = R // k

    x2 = x.reshape(R2, W)        # contiguous row-major -> free reshape
    m2 = m.reshape(R2, k)

    # ---- tile sizes ----------------------------------------------------------------
    row_bytes = W * itemsize
    xblk_budget = budget // 4                      # one data block; ~4x resident w/ dbl-buffered in+out
    if row_bytes * pack <= xblk_budget:
        tn = W
        per_row = 2 * (2 * row_bytes + 4 * k)      # dbl-buffered in + out + f32 mask
        tm = max(pack, (budget // per_row) // pack * pack)
    else:
        # Very wide feature dim: tile the lane axis too so VMEM stays bounded.
        tn = max(128, (xblk_budget // (pack * itemsize)) // 128 * 128)
        tm = pack
    # Keep >= 2 row blocks when there is enough work (dual-TensorCore sharding on v7x).
    tm = min(tm, max(pack, _round_up(_cdiv(R2, 2), pack)))
    tm = min(tm, _round_up(R2, pack))
    grid = (_cdiv(R2, tm), _cdiv(W, tn))

    if k > 1:
        onehot = jnp.asarray(
            (np.arange(W)[None, :] // D == np.arange(k)[:, None]).astype(np.float32))
        kernel = functools.partial(_mask_copy_fold_kernel,
                                   padding_value=float(padding_value))
        in_specs = [
            pl.BlockSpec((tm, k), lambda i, j: (i, 0)),    # per-row mask (tiny)
            pl.BlockSpec((k, W), lambda i, j: (0, 0)),     # one-hot expansion (fetched once)
            pl.BlockSpec((tm, tn), lambda i, j: (i, j)),   # data
        ]
        args = (m2, onehot, x2)
    else:
        kernel = functools.partial(_mask_copy_kernel,
                                   padding_value=float(padding_value))
        in_specs = [
            pl.BlockSpec((tm, 1), lambda i, j: (i, 0)),
            pl.BlockSpec((tm, tn), lambda i, j: (i, j)),
        ]
        args = (m2, x2)

    out = pl.pallas_call(
        kernel,
        out_shape=jax.ShapeDtypeStruct((R2, W), x.dtype),
        grid=grid,
        in_specs=in_specs,
        out_specs=pl.BlockSpec((tm, tn), lambda i, j: (i, j)),
        compiler_params=pltpu.CompilerParams(
            dimension_semantics=("parallel", "parallel")),
    )(*args)
    return out.reshape(shape)


def _dropblock_channel_first(x, key, dropout_rate, padding_value):
    # Original layout (B, C, S1, ..., Sn).  torch transposes (1, -1), drops one whole
    # channel fiber per (batch, spatial...) position, then transposes back.  Here the
    # kernel masks along the lane (spatial) axis of the untransposed layout directly,
    # saving two full-tensor transpose round trips through HBM.
    shape = x.shape
    B, C = int(shape[0]), int(shape[1])
    S = int(np.prod(shape[2:], dtype=np.int64))
    itemsize = jnp.dtype(x.dtype).itemsize
    pack = _sublane_pack(x.dtype)
    budget = _vmem_resident_budget()

    u = jax.random.uniform(key, (B, S), dtype=jnp.float32)
    m = (u < jnp.float32(dropout_rate)).astype(jnp.float32).reshape(B, 1, S)
    x3 = x.reshape(B, C, S)        # contiguous -> free reshape

    xblk_budget = budget // 4
    if S * itemsize * pack <= xblk_budget:
        ts = S
    else:
        ts = max(128, (xblk_budget // (pack * itemsize)) // 128 * 128)
    tc = (budget - 4 * ts * 4) // (4 * ts * itemsize)   # dbl-buffered in + out, minus mask
    tc = C if tc >= C else max(pack, tc // pack * pack)
    grid = (B, _cdiv(C, tc), _cdiv(S, ts))
    # TODO(synk): tiny spatial extent (S < 128) still stores narrow blocks; could fold
    # (C, S) into lanes like the channel-last path for full lane density.

    kernel = functools.partial(_mask_copy_cf_kernel, padding_value=float(padding_value))
    out = pl.pallas_call(
        kernel,
        out_shape=jax.ShapeDtypeStruct((B, C, S), x.dtype),
        grid=grid,
        in_specs=[
            pl.BlockSpec((1, 1, ts), lambda b, c, s: (b, 0, s)),
            pl.BlockSpec((1, tc, ts), lambda b, c, s: (b, c, s)),
        ],
        out_specs=pl.BlockSpec((1, tc, ts), lambda b, c, s: (b, c, s)),
        compiler_params=pltpu.CompilerParams(
            dimension_semantics=("parallel", "parallel", "parallel")),
    )(m, x3)
    return out.reshape(shape)


def dropblock(x, key, *, dropout_rate, padding_value=0.0, channel_first=False):
    assert 0.0 < dropout_rate < 1.0, "invalid dropout rate"
    assert channel_first in (True, False), "channel_first must be a boolean flag"
    x = jnp.asarray(x)
    assert x.ndim >= 1
    if channel_first and x.ndim >= 3:
        return _dropblock_channel_first(x, key, dropout_rate, padding_value)
    # channel_first with ndim <= 2: transpose(1, -1) is a no-op -> same as channel_last.
    return _dropblock_last(x, key, dropout_rate, padding_value)


# ----------------------------- self-test --------------------------------------------------

if __name__ == "__main__":
    dropout_rate = 0.3
    padding_value = 0.0
    rate32 = np.float32(dropout_rate)

    root = jax.random.PRNGKey(0)
    kx, kd1, kd2, kd3 = jax.random.split(root, 4)

    # --- channel-last, narrow feature dim -> lane-dense folded path (k = 4) --------------
    x = jax.random.normal(kx, (2, 8, 32), dtype=jnp.float32)
    y = jax.block_until_ready(
        dropblock(x, kd1, dropout_rate=dropout_rate, padding_value=padding_value))
    u = np.asarray(jax.random.uniform(kd1, (2 * 8,), dtype=jnp.float32))
    ref = np.where((u < rate32)[:, None], padding_value,
                   np.asarray(x).reshape(-1, 32)).reshape(x.shape)
    assert y.shape == x.shape
    assert np.array_equal(np.asarray(y), ref), "channel-last folded path mismatch"

    # --- channel_first: drop whole channel fibers per (batch, spatial) position ----------
    x_cf = jax.random.normal(jax.random.PRNGKey(1), (2, 32, 8), dtype=jnp.float32)
    y_cf = jax.block_until_ready(
        dropblock(x_cf, kd2, dropout_rate=dropout_rate, padding_value=padding_value,
                  channel_first=True))
    u_cf = np.asarray(jax.random.uniform(kd2, (2, 8), dtype=jnp.float32))
    ref_cf = np.where((u_cf < rate32)[:, None, :], padding_value, np.asarray(x_cf))
    assert y_cf.shape == x_cf.shape
    assert np.array_equal(np.asarray(y_cf), ref_cf), "channel_first path mismatch"

    # --- ragged rows + D that does not fold evenly (un-folded fallback path) -------------
    x_rg = jax.random.normal(jax.random.PRNGKey(2), (3, 5, 48), dtype=jnp.float32)
    y_rg = jax.block_until_ready(
        dropblock(x_rg, kd3, dropout_rate=dropout_rate, padding_value=padding_value))
    u_rg = np.asarray(jax.random.uniform(kd3, (15,), dtype=jnp.float32))
    ref_rg = np.where((u_rg < rate32)[:, None], padding_value,
                      np.asarray(x_rg).reshape(-1, 48)).reshape(x_rg.shape)
    assert np.array_equal(np.asarray(y_rg), ref_rg), "fallback path mismatch"

    print("KERNEL_OK")
</pallas_src>

<mosaic_0001>
module attributes {stable_mosaic.version = 11 : i64} {
  func.func @_mask_copy_fold_kernel(%arg0: i32, %arg1: i32, %arg2: memref<8x4xf32, #tpu.memory_space<vmem>>, %arg3: memref<4x128xf32, #tpu.memory_space<vmem>>, %arg4: memref<8x128xf32, #tpu.memory_space<vmem>>, %arg5: memref<8x128xf32, #tpu.memory_space<vmem>>) attributes {dimension_semantics = [#tpu.dimension_semantics<parallel>, #tpu.dimension_semantics<parallel>], iteration_bounds = array<i64: 1, 1>, scalar_prefetch = 0 : i64, scratch_operands = 0 : i64, tpu.core_type = #tpu.core_type<tc>, window_params = [{transform_indices = @transform_0, window_bounds = array<i64: 8, 4>}, {pipeline_mode = #tpu.pipeline_mode<synchronous>, transform_indices = @transform_1, window_bounds = array<i64: 4, 128>}, {transform_indices = @transform_2, window_bounds = array<i64: 8, 128>}, {transform_indices = @transform_3, window_bounds = array<i64: 8, 128>}]} {
    %c0 = arith.constant 0 : index
    %c0_0 = arith.constant 0 : index
    %0 = vector.load %arg4[%c0, %c0_0] : memref<8x128xf32, #tpu.memory_space<vmem>>, vector<8x128xf32>
    %c0_1 = arith.constant 0 : index
    %c0_2 = arith.constant 0 : index
    %1 = vector.load %arg2[%c0_1, %c0_2] : memref<8x4xf32, #tpu.memory_space<vmem>>, vector<8x4xf32>
    %c0_3 = arith.constant 0 : index
    %c0_4 = arith.constant 0 : index
    %2 = vector.load %arg3[%c0_3, %c0_4] : memref<4x128xf32, #tpu.memory_space<vmem>>, vector<4x128xf32>
    %cst = arith.constant dense<0.000000e+00> : vector<8x128xf32>
    %3 = tpu.matmul %1, %2, %cst {dimension_numbers = #tpu.dot_dimension_numbers<[1], [0], [0], [1], [0, 0, 1, 1], [], []>} : vector<8x4xf32>, vector<4x128xf32>, vector<8x128xf32> -> vector<8x128xf32>
    %cst_5 = arith.constant 5.000000e-01 : f32
    %4 = vector.broadcast %cst_5 : f32 to vector<8x128xf32>
    %5 = arith.cmpf ogt, %3, %4 : vector<8x128xf32>
    %cst_6 = arith.constant 0.000000e+00 : f32
    %6 = vector.broadcast %cst_6 : f32 to vector<8x128xf32>
    %7 = arith.select %5, %6, %0 : vector<8x128xi1>, vector<8x128xf32>
    %c0_7 = arith.constant 0 : index
    %c0_8 = arith.constant 0 : index
    %8 = vector.load %arg5[%c0_7, %c0_8] : memref<8x128xf32, #tpu.memory_space<vmem>>, vector<8x128xf32>
    tpu.vector_store %arg5[%c0_7, %c0_8], %7 {strides = array<i32>} : memref<8x128xf32, #tpu.memory_space<vmem>>, vector<8x128xf32>,
    return
  }
  func.func @transform_0(%arg0: i32, %arg1: i32) -> (i32, i32) {
    %c0_i32 = arith.constant 0 : i32
    %c0_i32_0 = arith.constant 0 : i32
    return %arg0, %c0_i32 : i32, i32
  }
  func.func @transform_1(%arg0: i32, %arg1: i32) -> (i32, i32) {
    %c0_i32 = arith.constant 0 : i32
    %c0_i32_0 = arith.constant 0 : i32
    %c0_i32_1 = arith.constant 0 : i32
    return %c0_i32, %c0_i32_0 : i32, i32
  }
  func.func @transform_2(%arg0: i32, %arg1: i32) -> (i32, i32) {
    %c0_i32 = arith.constant 0 : i32
    return %arg0, %arg1 : i32, i32
  }
  func.func @transform_3(%arg0: i32, %arg1: i32) -> (i32, i32) {
    %c0_i32 = arith.constant 0 : i32
    return %arg0, %arg1 : i32, i32
  }
}

</mosaic_0001>

<bundles_post_ra>
// kernel: tpu_custom_call.1
= control target key start
LH: loop header
LB: loop body
LE: loop exit
PB: predicated region body
PF: predicated region fallthrough
CT: control target
= control target key end

     0   :  { %8 = vsyncpa [#allocation3], 0  ;;  %s303_s0 = inlined_call_operand.hbm [shape: f32[4,4], index: 0, kind: input, shape index: {}]   ;;  %s304_s1 = inlined_call_operand.hbm [shape: f32[4,128], index: 1, kind: input, shape index: {}]   ;;  %s305_s2 = inlined_call_operand.vmem [shape: f32[4,128], index: 2, kind: input, shape index: {}]   ;;  %s306_s3 = inlined_call_operand.hbm [shape: f32[4,128], index: 3, kind: output, shape index: {}]  }
   0x1   :  { %9 = vsyncpa [#allocation6], 0 }
   0x2   :  { %10 = vsyncpa [#allocation4], 0 }
   0x3   :  { %15 = vsyncadd [#allocation3], 64  ;;  %s231_s12 = smov [#allocation2]   ;;  %s159_s16 = scalar_lea.hbm %s303_s0, 64 }
   0x4   :  { %s16_s13 = sshll.u32 %s231_s12, 4  ;;  %p160_p0 = scmp.ne.s32.totalorder %s303_s0, %s159_s16  ;;  %s17_s13 = int_to_ptr.vmem [resolvable:$true] %s16_s13 }
   0x5   :  { %p163_p1 = scmp.lt.u32.totalorder %s159_s16, %s303_s0 }
   0x7   :  { %p165_p2 = pnand %p163_p1, %p160_p0 }
   0x9   :  { %168 = shalt.err (!%p165_p2)
}
   0xa   :  { %s169_s21 = scalar_lea.vmem %s17_s13, 64  ;;  %s173_s22 = scalar_lea.vmem %s17_s13, 128 }
   0xb   :  { %p170_p3 = scmp.ne.s32.totalorder %s17_s13, %s169_s21  ;;  %p174_p4 = scmp.lt.s32.totalorder %s17_s13, %s17_s13 }
   0xc   :  { %p175_p5 = scmp.lt.s32.totalorder %s173_s22, %s169_s21 }
   0xe   :  { %p176_p6 = por %p175_p5, %p174_p4 }
  0x10   :  { %p177_p7 = pnand %p176_p6, %p170_p3 }
  0x12   :  { %180 = shalt.err (!%p177_p7)
}
  0x13   :  { %s232_s23 = smov 64   ;;  %s233_s24 = smov 4  }
  0x14   :  { %22 = dma.hbm_to_vmem [thread:$0]  %s303_s0, 64, %s17_s13, [#allocation3], %s232_s23, %s232_s23, %s233_s24  }
  0x15   :  { %s234_s27 = smov [#allocation5]   ;;  %s181_s4 = scalar_lea.hbm %s304_s1, 64 }
  0x16   :  { %s29_s28 = sshll.u32 %s234_s27, 4  ;;  %p182_p8 = scmp.ne.s32.totalorder %s304_s1, %s181_s4  ;;  %s30_s28 = int_to_ptr.vmem [resolvable:$true] %s29_s28 }
  0x17   :  { %p185_p9 = scmp.lt.u32.totalorder %s181_s4, %s304_s1 }
  0x19   :  { %p187_p10 = pnand %p185_p9, %p182_p8 }
  0x1b   :  { %190 = shalt.err (!%p187_p10)
}
  0x1c   :  { %s191_s9 = scalar_lea.vmem %s30_s28, 64  ;;  %p196_p12 = scmp.lt.s32.totalorder %s30_s28, %s30_s28 }
  0x1d   :  { %p192_p11 = scmp.ne.s32.totalorder %s30_s28, %s191_s9  ;;  %p197_p13 = scmp.lt.s32.totalorder %s191_s9, %s191_s9 }
  0x1f   :  { %p198_p0 = por %p197_p13, %p196_p12 }
  0x21   :  { %p199_p1 = pnand %p198_p0, %p192_p11 }
  0x23   :  { %202 = shalt.err (!%p199_p1)
}
  0x24   :  { %32 = dma.hbm_to_vmem [thread:$0]  %s304_s1, 64, %s30_s28, [#allocation6]  }
  0x25   :  { %225 = dma.done.wait [#allocation3], 128  }
  0x26   :  { %226 = vsyncadd [#allocation3], 4294967168 }
  0x27   :  { %227 = dma.done.wait [#allocation6], 64  }
  0x28   :  { %228 = vsyncadd [#allocation6], 4294967232  ;;  %v235_v0 = vmov 0.0   ;;  %vm236_vm0 = vmmov 0   ;;  %vm48_vm1 = vcmask 1043456   ;;  %vm44_vm2 = vcmask 31744  }
  0x29   :  { %147 = vmatprep.subr.mxu0 %v235_v0  ;;  %149 = vmatprep.mubr.msk.f32.mxu0 %vm236_vm0, %v235_v0  ;;  %v43_v1 = vld [vmem:[#allocation5] sm:$0xf]  ;;  %v42_v2 = vld [vmem:[#allocation2] sm:$0xff] }
  0x2a   :  { %148 = vmatpush3.msk.msra.mxu0 %vm48_vm1, %v43_v1  ;;  %v41_v3 = vld [vmem:[%s305_s2] sm:$0xff] }
  0x2b   :  { %150 = vmatmul.mubr.msk.f32.vlgmr.msra.gmra.mrb[0].mxu0 %vm44_vm2, %v42_v2 }
  0xfe   :  { %v118_v4 = vpop.f32.mrb[0].mxu0 }
  0xff   :  { %vm122_vm3 = vcmp.gt.f32.partialorder %v118_v4, 0.5  ;;  %v151_v5 = vpop.f32.mrb[1].mxu0 }
 0x100   :  { %v123_v6 = vsel %vm122_vm3, 0.0, %v41_v3 }
 0x101   :  { %124 = vst [vmem:[#allocation7] sm:$0xff] %v123_v6 }
 0x102   :  { %129 = vsyncadd [#allocation4], 64  ;;  %s237_s1 = smov [#allocation7]  }
 0x103   :  { %s130_s13 = sshll.u32 %s237_s1, 4  ;;  %s131_s13 = int_to_ptr.vmem [resolvable:$true] %s130_s13 }
 0x104   :  { %s203_s14 = scalar_lea.vmem %s131_s13, 64  ;;  %s207_s15 = scalar_lea.vmem %s131_s13, 128 }
 0x105   :  { %p204_p2 = scmp.ne.s32.totalorder %s131_s13, %s203_s14  ;;  %p208_p3 = scmp.lt.s32.totalorder %s131_s13, %s131_s13 }
 0x106   :  { %p209_p4 = scmp.lt.s32.totalorder %s207_s15, %s203_s14 }
 0x108   :  { %p210_p5 = por %p209_p4, %p208_p3 }
 0x10a   :  { %p211_p6 = pnand %p210_p5, %p204_p2 }
 0x10c   :  { %214 = shalt.err (!%p211_p6)
}
 0x10d   :  { %s215_s2 = scalar_lea.hbm %s306_s3, 64 }
 0x10e   :  { %p216_p7 = scmp.ne.s32.totalorder %s306_s3, %s215_s2  ;;  %p219_p8 = scmp.lt.u32.totalorder %s215_s2, %s306_s3 }
 0x110   :  { %p221_p9 = pnand %p219_p8, %p216_p7 }
 0x112   :  { %224 = shalt.err (!%p221_p9)
}
 0x113   :  { %136 = dma.vmem_to_hbm [thread:$0]  %s131_s13, 64, %s306_s3, [#allocation4], %s232_s23, %s232_s23, %s233_s24  }
 0x114   :  { %229 = dma.done.wait [#allocation4], 128  }
 0x115   :  { %230 = vsyncadd [#allocation4], 4294967168 }
 0x116   :  { %140 = vsyncpa [#allocation3], 1 }
 0x117   :  { %141 = vsyncpa [#allocation6], 1 }
 0x118   :  { %142 = vsyncpa [#allocation4], 1 }

</bundles_post_ra>
